<compile_context>
chip_gen: v7x
topology: tpu7x:2x2x1
jax: 0.10.0
libtpu: 0.0.40
codegen_flags: <defaults>
</compile_context>

<pallas_src>
import functools

import jax
import jax.numpy as jnp
from jax.experimental import pallas as pl
from jax.experimental.pallas import tpu as pltpu


# ----------------------------------------------------------------------------
# Parameter initialization (mirrors PINN_Net.Initial_param: xavier_normal_
# weights, zero biases).  Weights stored as (in, out) so the kernel computes
# h @ W (== x @ W.T + b in torch's Linear).
# ----------------------------------------------------------------------------
def init_params(key, layer_mat):
    params = []
    for i in range(len(layer_mat) - 1):
        fan_in, fan_out = layer_mat[i], layer_mat[i + 1]
        key, sub = jax.random.split(key)
        std = (2.0 / (fan_in + fan_out)) ** 0.5  # xavier_normal_
        w = std * jax.random.normal(sub, (fan_in, fan_out), dtype=jnp.float32)
        b = jnp.zeros((1, fan_out), dtype=jnp.float32)
        params.append((w, b))
    # lam1 / lam2 exist in the module but are NOT used in forward().
    key, k1, k2 = jax.random.split(key, 3)
    lam1 = jax.random.normal(k1, (1,), dtype=jnp.float32)
    lam2 = jax.random.normal(k2, (1,), dtype=jnp.float32)
    return params, lam1, lam2


# ----------------------------------------------------------------------------
# Hardware-dependent compute config.
#   pack:     8 (256 lanes, matches 2x256^2 MXU) on v6e/v7x, 4 (128) on v5e.
#   ew_dtype: bf16 elementwise (bias add + tanh) on v6e/v7x, f32 on v5e
#             (v5e has no bf16 VPU/EUP; bf16 there would only add casts).
# ----------------------------------------------------------------------------
def compute_config():
    try:
        kind = jax.devices()[0].device_kind.lower()
    except Exception:
        kind = ""
    newer = ("v6" in kind) or ("v7" in kind) or ("7x" in kind)
    pack = 8 if newer else 4
    ew_dtype = jnp.bfloat16 if newer else jnp.float32
    return pack, ew_dtype


def choose_batch_tile(n, pack, *, max_logical_tile=8192):
    """Logical-row tile: multiple of 8*pack, large to amortize grid-step
    overhead, but clamped so the 'parallel' grid has >= 2 steps when the batch
    allows it (keeps both v7x TensorCores busy)."""
    quantum = 8 * pack
    tile = max_logical_tile
    if n > 2 * quantum:
        tile = min(tile, pl.cdiv(n, 2 * quantum) * quantum)
    tile = min(tile, pl.cdiv(n, quantum) * quantum)
    return max(quantum, int(tile))


# ----------------------------------------------------------------------------
# One-time parameter packing: kron(I_pack, W) block-diagonal weights (bf16),
# lane-tiled biases (ew_dtype), and the last layer zero-padded to `out_lanes`
# output lanes so the kernel's output block is lane-dense.
# ----------------------------------------------------------------------------
def pack_params(params, pack, *, out_lanes=128, ew_dtype=jnp.float32):
    eye = jnp.eye(pack, dtype=jnp.float32)
    n_layers = len(params)
    flat = []
    for li, (w, b) in enumerate(params):
        w_bd = jnp.kron(eye, w.astype(jnp.float32))       # (pack*in, pack*out)
        b_tl = jnp.tile(b.astype(jnp.float32), (1, pack))  # (1, pack*out)
        if li == n_layers - 1:
            width = w_bd.shape[1]
            pad = max(out_lanes, width) - width
            if pad:
                w_bd = jnp.pad(w_bd, ((0, 0), (0, pad)))
                b_tl = jnp.pad(b_tl, ((0, 0), (0, pad)))
        flat.append(w_bd.astype(jnp.bfloat16))             # MXU operands in bf16
        flat.append(b_tl.astype(ew_dtype))
    return tuple(jax.device_put(a) for a in flat)


# ----------------------------------------------------------------------------
# Pallas kernel: whole (lane-packed) MLP for one batch tile.
#   - matmuls: bf16 x bf16 -> f32 accumulation on the MXU
#   - bias add + tanh: ew_dtype (bf16 on v6e/v7x, f32 on v5e)
# ----------------------------------------------------------------------------
def _make_mlp_kernel(n_layers, ew_dtype):
    def kernel(x_ref, *refs):
        o_ref = refs[-1]
        wb = refs[:-1]  # interleaved (w0, b0, w1, b1, ...), block-diag packed
        h = x_ref[...]  # bf16, lane-packed input
        for li in range(n_layers):
            w = wb[2 * li][...]
            b = wb[2 * li + 1][...]
            acc = jnp.dot(h, w, preferred_element_type=jnp.float32)
            z = acc.astype(ew_dtype) + b
            if li < n_layers - 1:
                h = jnp.tanh(z).astype(jnp.bfloat16)
            else:
                h = z
        o_ref[...] = h.astype(o_ref.dtype)

    return kernel


# ----------------------------------------------------------------------------
# Forward: equivalent of PINN_Net.forward(x, y, t) = base(cat([x, y, t], 1)).
# `packed` must come from pack_params().  The concat / pad / pack-reshape /
# unpack stay in the jitted wrapper so XLA fuses them with the pallas_call.
# ----------------------------------------------------------------------------
@functools.partial(jax.jit, static_argnames=("d_out", "batch_tile", "pack"))
def pinn_forward(packed, x, y, t, *, d_out, batch_tile, pack):
    rows = batch_tile // pack
    if batch_tile % pack != 0 or rows % 8 != 0:
        raise ValueError("batch_tile must be a multiple of 8*pack")

    X = jnp.concatenate([x, y, t], axis=1).astype(jnp.bfloat16)  # (N, 3)
    n, d_in = X.shape
    n_layers = len(packed) // 2
    ew_dtype = packed[1].dtype
    out_lanes = packed[-2].shape[1]  # last layer padded to 128 lanes

    n_pad = pl.cdiv(n, batch_tile) * batch_tile
    Xp = jnp.pad(X, ((0, n_pad - n), (0, 0)))
    # Free row-major reinterpretation: pack `pack` logical rows into the lanes.
    Xpk = Xp.reshape(n_pad // pack, d_in * pack)

    in_specs = [pl.BlockSpec((rows, d_in * pack), lambda i: (i, 0))]
    for arr in packed:
        # Small, resident across all grid steps (constant index_map).
        in_specs.append(pl.BlockSpec(arr.shape, lambda i: (0, 0)))

    out_pk = pl.pallas_call(
        _make_mlp_kernel(n_layers, ew_dtype),
        out_shape=jax.ShapeDtypeStruct((n_pad // pack, out_lanes), jnp.float32),
        grid=(n_pad // batch_tile,),
        in_specs=in_specs,
        out_specs=pl.BlockSpec((rows, out_lanes), lambda i: (i, 0)),
        compiler_params=pltpu.CompilerParams(
            dimension_semantics=("parallel",),
            vmem_limit_bytes=32 * 1024 * 1024,
        ),
    )(Xpk, *packed)

    # Drop the lane padding, unpack lanes back to rows, drop the batch padding.
    out = out_pk[:, : d_out * pack].reshape(n_pad, d_out)[:n]
    return out


# ----------------------------------------------------------------------------
# Pure-JAX f32 reference for correctness checking.
# ----------------------------------------------------------------------------
def pinn_forward_ref(params, x, y, t):
    h = jnp.concatenate([x, y, t], axis=1).astype(jnp.float32)
    for li, (w, b) in enumerate(params):
        h = h @ w + b
        if li < len(params) - 1:
            h = jnp.tanh(h)
    return h


if __name__ == "__main__":
    # layer_mat as typically used for this PINN: 3 inputs (x, y, t) -> 3 outputs (u, v, p)
    layer_mat = [3, 32, 32, 32, 3]

    key = jax.random.PRNGKey(0)
    key, kp, kx, ky, kt = jax.random.split(key, 5)
    params, lam1, lam2 = init_params(kp, layer_mat)

    N = 203  # deliberately not a multiple of pack or batch tile (exercises padding)
    x = jax.random.normal(kx, (N, 1), dtype=jnp.float32)
    y = jax.random.normal(ky, (N, 1), dtype=jnp.float32)
    t = jax.random.normal(kt, (N, 1), dtype=jnp.float32)

    pack, ew_dtype = compute_config()
    packed = pack_params(params, pack, out_lanes=128, ew_dtype=ew_dtype)  # built once
    batch_tile = choose_batch_tile(N, pack)

    out = pinn_forward(packed, x, y, t,
                       d_out=layer_mat[-1], batch_tile=batch_tile, pack=pack)
    out = jax.block_until_ready(out)

    ref = pinn_forward_ref(params, x, y, t)
    assert out.shape == (N, layer_mat[-1])
    # bf16 MXU operands (+ bf16 tanh on v6e/v7x) => bf16-level accuracy vs f32 ref.
    assert jnp.allclose(out, ref, atol=5e-2, rtol=5e-2), "mismatch vs JAX reference"

    print("KERNEL_OK")
</pallas_src>

<mosaic_0001>
module attributes {stable_mosaic.version = 11 : i64} {
  func.func @kernel(%arg0: i32, %arg1: memref<32x12xbf16, #tpu.memory_space<vmem>>, %arg2: memref<12x128xbf16, #tpu.memory_space<vmem>>, %arg3: memref<1x128xf32, #tpu.memory_space<vmem>>, %arg4: memref<128x128xbf16, #tpu.memory_space<vmem>>, %arg5: memref<1x128xf32, #tpu.memory_space<vmem>>, %arg6: memref<128x128xbf16, #tpu.memory_space<vmem>>, %arg7: memref<1x128xf32, #tpu.memory_space<vmem>>, %arg8: memref<128x128xbf16, #tpu.memory_space<vmem>>, %arg9: memref<1x128xf32, #tpu.memory_space<vmem>>, %arg10: memref<32x128xf32, #tpu.memory_space<vmem>>) attributes {dimension_semantics = [#tpu.dimension_semantics<parallel>], iteration_bounds = array<i64: 2>, scalar_prefetch = 0 : i64, scratch_operands = 0 : i64, tpu.core_type = #tpu.core_type<tc>, window_params = [{transform_indices = @transform_0, window_bounds = array<i64: 32, 12>}, {pipeline_mode = #tpu.pipeline_mode<synchronous>, transform_indices = @transform_1, window_bounds = array<i64: 12, 128>}, {pipeline_mode = #tpu.pipeline_mode<synchronous>, transform_indices = @transform_2, window_bounds = array<i64: 1, 128>}, {pipeline_mode = #tpu.pipeline_mode<synchronous>, transform_indices = @transform_3, window_bounds = array<i64: 128, 128>}, {pipeline_mode = #tpu.pipeline_mode<synchronous>, transform_indices = @transform_4, window_bounds = array<i64: 1, 128>}, {pipeline_mode = #tpu.pipeline_mode<synchronous>, transform_indices = @transform_5, window_bounds = array<i64: 128, 128>}, {pipeline_mode = #tpu.pipeline_mode<synchronous>, transform_indices = @transform_6, window_bounds = array<i64: 1, 128>}, {pipeline_mode = #tpu.pipeline_mode<synchronous>, transform_indices = @transform_7, window_bounds = array<i64: 128, 128>}, {pipeline_mode = #tpu.pipeline_mode<synchronous>, transform_indices = @transform_8, window_bounds = array<i64: 1, 128>}, {transform_indices = @transform_9, window_bounds = array<i64: 32, 128>}]} {
    %c0 = arith.constant 0 : index
    %c0_0 = arith.constant 0 : index
    %0 = vector.load %arg1[%c0, %c0_0] : memref<32x12xbf16, #tpu.memory_space<vmem>>, vector<32x12xbf16>
    %c0_1 = arith.constant 0 : index
    %c0_2 = arith.constant 0 : index
    %1 = vector.load %arg2[%c0_1, %c0_2] : memref<12x128xbf16, #tpu.memory_space<vmem>>, vector<12x128xbf16>
    %c0_3 = arith.constant 0 : index
    %c0_4 = arith.constant 0 : index
    %2 = vector.load %arg3[%c0_3, %c0_4] : memref<1x128xf32, #tpu.memory_space<vmem>>, vector<1x128xf32>
    %cst = arith.constant dense<0.000000e+00> : vector<32x128xf32>
    %3 = tpu.matmul %0, %1, %cst {dimension_numbers = #tpu.dot_dimension_numbers<[1], [0], [0], [1], [0, 0, 1, 1], [], []>} : vector<32x12xbf16>, vector<12x128xbf16>, vector<32x128xf32> -> vector<32x128xf32>
    %4 = vector.broadcast %2 : vector<1x128xf32> to vector<32x128xf32>
    %5 = arith.addf %3, %4 : vector<32x128xf32>
    %6 = math.tanh %5 : vector<32x128xf32>
    %7 = arith.truncf %6 : vector<32x128xf32> to vector<32x128xbf16>
    %c0_5 = arith.constant 0 : index
    %c0_6 = arith.constant 0 : index
    %8 = vector.load %arg4[%c0_5, %c0_6] : memref<128x128xbf16, #tpu.memory_space<vmem>>, vector<128x128xbf16>
    %c0_7 = arith.constant 0 : index
    %c0_8 = arith.constant 0 : index
    %9 = vector.load %arg5[%c0_7, %c0_8] : memref<1x128xf32, #tpu.memory_space<vmem>>, vector<1x128xf32>
    %cst_9 = arith.constant dense<0.000000e+00> : vector<32x128xf32>
    %10 = tpu.matmul %7, %8, %cst_9 {dimension_numbers = #tpu.dot_dimension_numbers<[1], [0], [0], [1], [0, 0, 1, 1], [], []>} : vector<32x128xbf16>, vector<128x128xbf16>, vector<32x128xf32> -> vector<32x128xf32>
    %11 = vector.broadcast %9 : vector<1x128xf32> to vector<32x128xf32>
    %12 = arith.addf %10, %11 : vector<32x128xf32>
    %13 = math.tanh %12 : vector<32x128xf32>
    %14 = arith.truncf %13 : vector<32x128xf32> to vector<32x128xbf16>
    %c0_10 = arith.constant 0 : index
    %c0_11 = arith.constant 0 : index
    %15 = vector.load %arg6[%c0_10, %c0_11] : memref<128x128xbf16, #tpu.memory_space<vmem>>, vector<128x128xbf16>
    %c0_12 = arith.constant 0 : index
    %c0_13 = arith.constant 0 : index
    %16 = vector.load %arg7[%c0_12, %c0_13] : memref<1x128xf32, #tpu.memory_space<vmem>>, vector<1x128xf32>
    %cst_14 = arith.constant dense<0.000000e+00> : vector<32x128xf32>
    %17 = tpu.matmul %14, %15, %cst_14 {dimension_numbers = #tpu.dot_dimension_numbers<[1], [0], [0], [1], [0, 0, 1, 1], [], []>} : vector<32x128xbf16>, vector<128x128xbf16>, vector<32x128xf32> -> vector<32x128xf32>
    %18 = vector.broadcast %16 : vector<1x128xf32> to vector<32x128xf32>
    %19 = arith.addf %17, %18 : vector<32x128xf32>
    %20 = math.tanh %19 : vector<32x128xf32>
    %21 = arith.truncf %20 : vector<32x128xf32> to vector<32x128xbf16>
    %c0_15 = arith.constant 0 : index
    %c0_16 = arith.constant 0 : index
    %22 = vector.load %arg8[%c0_15, %c0_16] : memref<128x128xbf16, #tpu.memory_space<vmem>>, vector<128x128xbf16>
    %c0_17 = arith.constant 0 : index
    %c0_18 = arith.constant 0 : index
    %23 = vector.load %arg9[%c0_17, %c0_18] : memref<1x128xf32, #tpu.memory_space<vmem>>, vector<1x128xf32>
    %cst_19 = arith.constant dense<0.000000e+00> : vector<32x128xf32>
    %24 = tpu.matmul %21, %22, %cst_19 {dimension_numbers = #tpu.dot_dimension_numbers<[1], [0], [0], [1], [0, 0, 1, 1], [], []>} : vector<32x128xbf16>, vector<128x128xbf16>, vector<32x128xf32> -> vector<32x128xf32>
    %25 = vector.broadcast %23 : vector<1x128xf32> to vector<32x128xf32>
    %26 = arith.addf %24, %25 : vector<32x128xf32>
    %c0_20 = arith.constant 0 : index
    %c0_21 = arith.constant 0 : index
    %27 = vector.load %arg10[%c0_20, %c0_21] : memref<32x128xf32, #tpu.memory_space<vmem>>, vector<32x128xf32>
    tpu.vector_store %arg10[%c0_20, %c0_21], %26 {strides = array<i32>} : memref<32x128xf32, #tpu.memory_space<vmem>>, vector<32x128xf32>,
    return
  }
  func.func @transform_0(%arg0: i32) -> (i32, i32) {
    %c0_i32 = arith.constant 0 : i32
    %c0_i32_0 = arith.constant 0 : i32
    return %arg0, %c0_i32 : i32, i32
  }
  func.func @transform_1(%arg0: i32) -> (i32, i32) {
    %c0_i32 = arith.constant 0 : i32
    %c0_i32_0 = arith.constant 0 : i32
    %c0_i32_1 = arith.constant 0 : i32
    return %c0_i32, %c0_i32_0 : i32, i32
  }
  func.func @transform_2(%arg0: i32) -> (i32, i32) {
    %c0_i32 = arith.constant 0 : i32
    %c0_i32_0 = arith.constant 0 : i32
    %c0_i32_1 = arith.constant 0 : i32
    return %c0_i32, %c0_i32_0 : i32, i32
  }
  func.func @transform_3(%arg0: i32) -> (i32, i32) {
    %c0_i32 = arith.constant 0 : i32
    %c0_i32_0 = arith.constant 0 : i32
    %c0_i32_1 = arith.constant 0 : i32
    return %c0_i32, %c0_i32_0 : i32, i32
  }
  func.func @transform_4(%arg0: i32) -> (i32, i32) {
    %c0_i32 = arith.constant 0 : i32
    %c0_i32_0 = arith.constant 0 : i32
    %c0_i32_1 = arith.constant 0 : i32
    return %c0_i32, %c0_i32_0 : i32, i32
  }
  func.func @transform_5(%arg0: i32) -> (i32, i32) {
    %c0_i32 = arith.constant 0 : i32
    %c0_i32_0 = arith.constant 0 : i32
    %c0_i32_1 = arith.constant 0 : i32
    return %c0_i32, %c0_i32_0 : i32, i32
  }
  func.func @transform_6(%arg0: i32) -> (i32, i32) {
    %c0_i32 = arith.constant 0 : i32
    %c0_i32_0 = arith.constant 0 : i32
    %c0_i32_1 = arith.constant 0 : i32
    return %c0_i32, %c0_i32_0 : i32, i32
  }
  func.func @transform_7(%arg0: i32) -> (i32, i32) {
    %c0_i32 = arith.constant 0 : i32
    %c0_i32_0 = arith.constant 0 : i32
    %c0_i32_1 = arith.constant 0 : i32
    return %c0_i32, %c0_i32_0 : i32, i32
  }
  func.func @transform_8(%arg0: i32) -> (i32, i32) {
    %c0_i32 = arith.constant 0 : i32
    %c0_i32_0 = arith.constant 0 : i32
    %c0_i32_1 = arith.constant 0 : i32
    return %c0_i32, %c0_i32_0 : i32, i32
  }
  func.func @transform_9(%arg0: i32) -> (i32, i32) {
    %c0_i32 = arith.constant 0 : i32
    %c0_i32_0 = arith.constant 0 : i32
    return %arg0, %c0_i32 : i32, i32
  }
}

</mosaic_0001>

<bundles_post_ra>
// kernel: pinn_forward.1
= control target key start
LH: loop header
LB: loop body
LE: loop exit
PB: predicated region body
PF: predicated region fallthrough
CT: control target
= control target key end

     0   :  { %s1124_s30 = smov 0   ;;  %s1232_s0 = inlined_call_operand.vmem [shape: bf16[64,12], index: 0, kind: input, shape index: {}]   ;;  %s1233_s1 = inlined_call_operand.vmem [shape: bf16[12,128], index: 1, kind: input, shape index: {}]   ;;  %s1234_s2 = inlined_call_operand.vmem [shape: f32[1,128], index: 2, kind: input, shape index: {}]   ;;  %s1235_s3 = inlined_call_operand.vmem [shape: bf16[128,128], index: 3, kind: input, shape index: {}]   ;;  %s1236_s4 = inlined_call_operand.vmem [shape: f32[1,128], index: 4, kind: input, shape index: {}]   ;;  %s1237_s5 = inlined_call_operand.vmem [shape: bf16[128,128], index: 5, kind: input, shape index: {}]   ;;  %s1238_s6 = inlined_call_operand.vmem [shape: f32[1,128], index: 6, kind: input, shape index: {}]   ;;  %s1239_s7 = inlined_call_operand.vmem [shape: bf16[128,128], index: 7, kind: input, shape index: {}]   ;;  %s1240_s8 = inlined_call_operand.vmem [shape: f32[1,128], index: 8, kind: input, shape index: {}]   ;;  %s1241_s9 = inlined_call_operand.vmem [shape: f32[64,128], index: 9, kind: output, shape index: {}]  }
   0x1 LB: > { %s863_s10 = sadd.s32 4294967295, %s1072_s30   ;;  %p867_p0 = scmp.ge.s32.totalorder %s1072_s30, 1  ;;  %s1072_s30 = sphi %s1124_s30, %s19_s30  }
   0x2   : > { %p288_p1 = scmp.lt.s32.totalorder %s1072_s30, 3 }
   0x4   : > { %p289_p2 = pnand %p867_p0, %p288_p1 }
   0x5   : > { %v1015_v0 = vld [vmem:[%s1233_s1] sm:$0x3f] (!%p289_p2)   ;;  %vm372_vm0 = vcmask (!%p289_p2), 1045504   ;;  %s868_s13 = sshll.u32 (!%p289_p2), %s863_s10, 2  ;;  %v1019_v3 = vld [vmem:[%s1235_s3 + $0x8] sm:$0xff] (!%p289_p2)   ;;  %v1020_v4 = vld [vmem:[%s1235_s3 + $0x10] sm:$0xff] (!%p289_p2)  }
   0x6   : > { %292 = sbr.rel (%p289_p2) target bundleno = 929 (0x3a1), region = 56  ;;  %v1018_v1 = vld [vmem:[%s1235_s3] sm:$0xff] (!%p289_p2)   ;;  %1006 = vmatprep.subr.msk.bf16.mxu0 (!%p289_p2), %vm372_vm0, %v1015_v0  ;;  %v374_v2 = vsel (!%p289_p2), %vm372_vm0, %v1015_v0, 0  ;;  %p325_p3 = scmp.lt.s32.totalorder (!%p289_p2), %s868_s13, 7  ;;  %vm365_vm1 = vcmask (!%p289_p2), 97280   ;;  %v1021_v7 = vld [vmem:[%s1235_s3 + $0x18] sm:$0xff] (!%p289_p2)  }
   0x7   : > { %941 = vmatpush3.bf16.msra.mxu0 (!%p289_p2), %v374_v2  ;;  %946 = vmatprep.subr.bf16.mxu1 (!%p289_p2), %v1018_v1  ;;  %v1022_v8 = vld [vmem:[%s1235_s3 + $0x20] sm:$0xff] (!%p289_p2)   ;;  %v1023_v9 = vld [vmem:[%s1235_s3 + $0x28] sm:$0xff] (!%p289_p2)   ;;  %v1024_v10 = vld [vmem:[%s1235_s3 + $0x30] sm:$0xff] (!%p289_p2)  }
   0x8   : > { %947 = vmatpush3.bf16.msra.mxu1 (!%p289_p2), %v1018_v1  ;;  %v1025_v11 = vld [vmem:[%s1235_s3 + $0x38] sm:$0xff] (!%p289_p2)   ;;  %v1026_v12 = vld [vmem:[%s1237_s5] sm:$0xff] (!%p289_p2)   ;;  %v1027_v13 = vld [vmem:[%s1237_s5 + $0x8] sm:$0xff] (!%p289_p2)  }
   0x9   : > { %948 = vmatprep.subr.bf16.mxu1 (!%p289_p2), %v1019_v3  ;;  %966 = vmatprep.subr.bf16.mxu0 (!%p289_p2), %v1026_v12  ;;  %v1028_v14 = vld [vmem:[%s1237_s5 + $0x10] sm:$0xff] (!%p289_p2)   ;;  %v872_v15 = vld [vmem:[%s1234_s2] ss:$0 sm:$0xff] (!%p289_p2)  ;;  %v1029_v30 = vld [vmem:[%s1237_s5 + $0x18] sm:$0xff] (!%p289_p2)  }
   0xa   : > { %v1030_v31 = vld [vmem:[%s1237_s5 + $0x20] sm:$0xff] (!%p289_p2)   ;;  %v1031_v32 = vld [vmem:[%s1237_s5 + $0x28] sm:$0xff] (!%p289_p2)   ;;  %v1032_v33 = vld [vmem:[%s1237_s5 + $0x30] sm:$0xff] (!%p289_p2)  }
   0xb   : > { %v1033_v34 = vld [vmem:[%s1237_s5 + $0x38] sm:$0xff] (!%p289_p2)   ;;  %v1034_v35 = vld [vmem:[%s1239_s7] sm:$0xff] (!%p289_p2)   ;;  %v1035_v36 = vld [vmem:[%s1239_s7 + $0x8] sm:$0xff] (!%p289_p2)  }
   0xc   : > { %949 = vmatpush3.bf16.msra.mxu1 (!%p289_p2), %v1019_v3  ;;  %v1036_v37 = vld [vmem:[%s1239_s7 + $0x10] sm:$0xff] (!%p289_p2)   ;;  %v878_v38 = vld [vmem:[%s1236_s4] ss:$0 sm:$0xff] (!%p289_p2)  ;;  %v1037_v53 = vld [vmem:[%s1239_s7 + $0x18] sm:$0xff] (!%p289_p2)  }
   0xd   : > { %s1243_s13 = smov (!%p325_p3, %s868_s13), 7  ;;  %950 = vmatprep.subr.bf16.mxu1 %v1020_v4  ;;  %v1038_v54 = vld [vmem:[%s1239_s7 + $0x20] sm:$0xff]   ;;  %v1039_v55 = vld [vmem:[%s1239_s7 + $0x28] sm:$0xff]   ;;  %v1040_v56 = vld [vmem:[%s1239_s7 + $0x30] sm:$0xff]  }
   0xe   : > { %s869_s20 = sshll.u32 %s1243_s13, 2  ;;  %v1041_v57 = vld [vmem:[%s1239_s7 + $0x38] sm:$0xff]   ;;  %v887_v58 = vld [vmem:[%s1238_s6] ss:$0 sm:$0xff]  ;;  %s871_s15 = sshll.u32 %s1243_s13, 3 }
   0xf   : > { %s328_s23 = scalar_lea.vmem %s1232_s0, %s869_s20  ;;  %s334_s20 = scalar_lea.vmem %s1241_s9, %s871_s15 }
  0x10   : > { %v1016_v5 = vld [vmem:[%s328_s23] sm:$0xff]   ;;  %v1017_v6 = vld [vmem:[%s328_s23 + $0x8] sm:$0xff]   ;;  %951 = vmatpush3.bf16.msra.mxu1 %v1020_v4 }
  0x11   : > { %942 = vmatprep.mubr.msk.bf16.mxu0 %vm365_vm1, %v1016_v5  ;;  %952 = vmatprep.subr.bf16.mxu1 %v1021_v7 }
  0x12   : > { %943 = vmatmul.mubr.msk.bf16.vlgmr.msra.gmra.mrb[0].mxu0 %vm365_vm1, %v1017_v6 }
  0x13   : > { %967 = vmatpush3.bf16.msra.mxu0 %v1026_v12 }
  0x14   : > { %953 = vmatpush3.bf16.msra.mxu1 %v1021_v7  ;;  %968 = vmatprep.subr.bf16.mxu0 %v1027_v13 }
  0x15   : > { %954 = vmatprep.subr.bf16.mxu1 %v1022_v8 }
  0x17   : > { %969 = vmatpush3.bf16.msra.mxu0 %v1027_v13 }
  0x18   : > { %955 = vmatpush3.bf16.msra.mxu1 %v1022_v8  ;;  %970 = vmatprep.subr.bf16.mxu0 %v1028_v14 }
  0x19   : > { %956 = vmatprep.subr.bf16.mxu1 %v1023_v9 }
  0x1b   : > { %971 = vmatpush3.bf16.msra.mxu0 %v1028_v14 }
  0x1c   : > { %957 = vmatpush3.bf16.msra.mxu1 %v1023_v9  ;;  %972 = vmatprep.subr.bf16.mxu0 %v1029_v30  ;;  %v896_v9 = vld [vmem:[%s1240_s8] ss:$0 sm:$0xff] }
  0x1d   : > { %958 = vmatprep.subr.bf16.mxu1 %v1024_v10 }
  0x1f   : > { %973 = vmatpush3.bf16.msra.mxu0 %v1029_v30 }
  0x20   : > { %959 = vmatpush3.bf16.msra.mxu1 %v1024_v10  ;;  %974 = vmatprep.subr.bf16.mxu0 %v1030_v31 }
  0x21   : > { %960 = vmatprep.subr.bf16.mxu1 %v1025_v11 }
  0x23   : > { %975 = vmatpush3.bf16.msra.mxu0 %v1030_v31 }
  0x24   : > { %961 = vmatpush3.bf16.msra.mxu1 %v1025_v11  ;;  %976 = vmatprep.subr.bf16.mxu0 %v1031_v32 }
  0x25   : > { %986 = vmatprep.subr.bf16.mxu1 %v1034_v35 }
  0x27   : > { %977 = vmatpush3.bf16.msra.mxu0 %v1031_v32 }
  0x28   : > { %978 = vmatprep.subr.bf16.mxu0 %v1032_v33 }
  0x2b   : > { %979 = vmatpush3.bf16.msra.mxu0 %v1032_v33 }
  0x2c   : > { %980 = vmatprep.subr.bf16.mxu0 %v1033_v34 }
  0x2f   : > { %981 = vmatpush3.bf16.msra.mxu0 %v1033_v34 }
  0xe5   : > { %v944_v16 = vpop.f32.mrb[0].mxu0 }
  0xe6   : > { %v419_v17 = vadd.f32 %v944_v16, %v872_v15  ;;  %v410_v18 = vpop.f32.mrb[1].mxu0 }
  0xe7   : > { %v411_v19 = vadd.f32 %v872_v15, %v410_v18  ;;  %v945_v20 = vpop.f32.mrb[2].mxu0 }
  0xe8   : > { %1042 = vtanh.f32 %v419_v17  ;;  %v422_v21 = vadd.f32 %v945_v20, %v872_v15  ;;  %v413_v22 = vpop.f32.mrb[3].mxu0 }
  0xe9   : > { %1044 = vtanh.f32 %v411_v19  ;;  %v414_v23 = vadd.f32 %v872_v15, %v413_v22 }
  0xea   : > { %1046 = vtanh.f32 %v422_v21 }
  0xeb   : > { %1048 = vtanh.f32 %v414_v23 }
  0xf2   : > { %v1043_v24 = vpop.eup %1042 }
  0xf3   : > { %v1045_v25 = vpop.eup %1044 }
  0xf4   : > { %v1047_v26 = vpop.eup %1046 }
  0xf5   : > { %v1049_v27 = vpop.eup %1048  ;;  %v430_v28 = vpack.c.bf16 %v1047_v26, %v1043_v24 }
  0xf6   : > { %v429_v29 = vpack.c.bf16 %v1049_v27, %v1045_v25 }
  0xf8   : > { %962 = vmatprep.mubr.bf16.mxu1 %v429_v29 }
  0xf9   : > { %963 = vmatmul.mubr.bf16.vlgmr.msra.gmra.mrb[0].mxu1 %v430_v28 }
  0xfa   : > { %987 = vmatpush3.bf16.msra.mxu1 %v1034_v35 }
  0xfb   : > { %988 = vmatprep.subr.bf16.mxu1 %v1035_v36 }
  0xfe   : > { %989 = vmatpush3.bf16.msra.mxu1 %v1035_v36 }
  0xff   : > { %990 = vmatprep.subr.bf16.mxu1 %v1036_v37 }
 0x102   : > { %991 = vmatpush3.bf16.msra.mxu1 %v1036_v37 }
 0x103   : > { %992 = vmatprep.subr.bf16.mxu1 %v1037_v53 }
 0x106   : > { %993 = vmatpush3.bf16.msra.mxu1 %v1037_v53 }
 0x107   : > { %994 = vmatprep.subr.bf16.mxu1 %v1038_v54 }
 0x10a   : > { %995 = vmatpush3.bf16.msra.mxu1 %v1038_v54 }
 0x10b   : > { %996 = vmatprep.subr.bf16.mxu1 %v1039_v55 }
 0x10e   : > { %997 = vmatpush3.bf16.msra.mxu1 %v1039_v55 }
 0x10f   : > { %998 = vmatprep.subr.bf16.mxu1 %v1040_v56 }
 0x112   : > { %999 = vmatpush3.bf16.msra.mxu1 %v1040_v56 }
 0x113   : > { %1000 = vmatprep.subr.bf16.mxu1 %v1041_v57 }
 0x116   : > { %1001 = vmatpush3.bf16.msra.mxu1 %v1041_v57 }
 0x1cc   : > { %v964_v39 = vpop.f32.mrb[0].mxu1 }
 0x1cd   : > { %v545_v40 = vadd.f32 %v964_v39, %v878_v38  ;;  %v536_v41 = vpop.f32.mrb[1].mxu1 }
 0x1ce   : > { %v537_v42 = vadd.f32 %v878_v38, %v536_v41  ;;  %v965_v43 = vpop.f32.mrb[2].mxu1 }
 0x1cf   : > { %1050 = vtanh.f32 %v545_v40  ;;  %v548_v44 = vadd.f32 %v965_v43, %v878_v38  ;;  %v539_v45 = vpop.f32.mrb[3].mxu1 }
 0x1d0   : > { %1052 = vtanh.f32 %v537_v42  ;;  %v540_v46 = vadd.f32 %v878_v38, %v539_v45 }
 0x1d1   : > { %1054 = vtanh.f32 %v548_v44 }
 0x1d2   : > { %1056 = vtanh.f32 %v540_v46 }
 0x1d9   : > { %v1051_v47 = vpop.eup %1050 }
 0x1da   : > { %v1053_v48 = vpop.eup %1052 }
 0x1db   : > { %v1055_v49 = vpop.eup %1054 }
 0x1dc   : > { %v1057_v50 = vpop.eup %1056  ;;  %v556_v51 = vpack.c.bf16 %v1055_v49, %v1051_v47 }
 0x1dd   : > { %v555_v52 = vpack.c.bf16 %v1057_v50, %v1053_v48 }
 0x1df   : > { %982 = vmatprep.mubr.bf16.mxu0 %v555_v52 }
 0x1e0   : > { %983 = vmatmul.mubr.bf16.vlgmr.msra.gmra.mrb[4].mxu0 %v556_v51 }
 0x2b3   : > { %v984_v59 = vpop.f32.mrb[4].mxu0 }
 0x2b4   : > { %v671_v60 = vadd.f32 %v984_v59, %v887_v58  ;;  %v662_v61 = vpop.f32.mrb[5].mxu0 }
 0x2b5   : > { %v663_v62 = vadd.f32 %v887_v58, %v662_v61  ;;  %v985_v63 = vpop.f32.mrb[6].mxu0 }
 0x2b6   : > { %1058 = vtanh.f32 %v671_v60  ;;  %v674_v0 = vadd.f32 %v985_v63, %v887_v58  ;;  %v665_v1 = vpop.f32.mrb[7].mxu0 }
 0x2b7   : > { %1060 = vtanh.f32 %v663_v62  ;;  %v666_v2 = vadd.f32 %v887_v58, %v665_v1 }
 0x2b8   : > { %1062 = vtanh.f32 %v674_v0 }
 0x2b9   : > { %1064 = vtanh.f32 %v666_v2 }
 0x2c0   : > { %v1059_v3 = vpop.eup %1058 }
 0x2c1   : > { %v1061_v4 = vpop.eup %1060 }
 0x2c2   : > { %v1063_v5 = vpop.eup %1062 }
 0x2c3   : > { %v1065_v6 = vpop.eup %1064  ;;  %v682_v7 = vpack.c.bf16 %v1063_v5, %v1059_v3 }
 0x2c4   : > { %v681_v8 = vpack.c.bf16 %v1065_v6, %v1061_v4 }
 0x2c6   : > { %1002 = vmatprep.mubr.bf16.mxu1 %v681_v8 }
 0x2c7   : > { %1003 = vmatmul.mubr.bf16.vlgmr.msra.gmra.mrb[4].mxu1 %v682_v7 }
 0x39a   : > { %v1004_v10 = vpop.f32.mrb[4].mxu1 }
 0x39b   : > { %v788_v11 = vpop.f32.mrb[5].mxu1  ;;  %v797_v16 = vadd.f32 %v1004_v10, %v896_v9 }
 0x39c   : > { %v789_v12 = vadd.f32 %v896_v9, %v788_v11  ;;  %v1005_v13 = vpop.f32.mrb[6].mxu1 }
 0x39d   : > { %v791_v14 = vpop.f32.mrb[7].mxu1  ;;  %v800_v17 = vadd.f32 %v1005_v13, %v896_v9  ;;  %805 = vst [vmem:[%s334_s20 + $0x10] sm:$0xff] %v797_v16 }
 0x39e   : > { %803 = vst [vmem:[%s334_s20] sm:$0xff] %v789_v12  ;;  %v792_v15 = vadd.f32 %v896_v9, %v791_v14 }
 0x39f   : > { %806 = vst [vmem:[%s334_s20 + $0x18] sm:$0xff] %v800_v17 }
 0x3a0   : > { %804 = vst [vmem:[%s334_s20 + $0x8] sm:$0xff] %v792_v15 }
 0x3a1 PF: > { %s19_s30 = sadd.s32 1, %s1072_s30  }
 0x3a2   : > { %p16_p4 = scmp.ge.s32.totalorder %s19_s30, 4  }
 0x3a4   :  { %18 = sbr.rel (!%p16_p4) target bundleno = 1 (0x1), region = 86 }

</bundles_post_ra>
